<compile_context>
chip_gen: v7x
topology: tpu7x:2x2x1
jax: 0.10.0
libtpu: 0.0.40
codegen_flags: <defaults>
</compile_context>

<pallas_src>
import functools

import jax
import jax.numpy as jnp
from jax.experimental import pallas as pl
from jax.experimental.pallas import tpu as pltpu

EPS = 1e-5


# --------------------------------------------------------------------------
# Kernel helpers
# --------------------------------------------------------------------------
def _mix(w_ref, xs):
    """y[o] = sum_c w[o, c] * xs[c] with w in SMEM (Co, Ci), xs list of (TR,128)."""
    co, ci = w_ref.shape
    out = []
    for o in range(co):
        acc = w_ref[o, 0] * xs[0]
        for c in range(1, ci):
            acc = acc + w_ref[o, c] * xs[c]
        out.append(acc)
    return out


def _tile_mask(tr, ns_g, tile_elems, s_valid):
    """0/1 mask (TR,128) of columns whose flat spatial index < s_valid."""
    tile = pl.program_id(1) * ns_g + pl.program_id(2)
    idx = (tile * tile_elems
           + jax.lax.broadcasted_iota(jnp.int32, (tr, 128), 0) * 128
           + jax.lax.broadcasted_iota(jnp.int32, (tr, 128), 1))
    return (idx < s_valid).astype(jnp.float32)


def _accum_stats(vals, mask, sum_ref, sq_ref):
    @pl.when(pl.program_id(2) == 0)
    def _():
        sum_ref[...] = jnp.zeros_like(sum_ref)
        sq_ref[...] = jnp.zeros_like(sq_ref)

    for o, v in enumerate(vals):
        sq = v * v
        if mask is not None:
            v = v * mask
            sq = sq * mask
        sum_ref[0, 0, o, :] += jnp.sum(v, axis=0)
        sq_ref[0, 0, o, :] += jnp.sum(sq, axis=0)


# --------------------------------------------------------------------------
# Kernels
# --------------------------------------------------------------------------
def _stats1_kernel(x_ref, skw_ref, skb_ref, sum_ref, sq_ref, *,
                   ns_g, tile_elems, s_valid, masked):
    """Per-channel sum/sumsq of x_post = (I + skip_w) x + skip_b."""
    c_in = x_ref.shape[1]
    tr = x_ref.shape[2]
    xs = [x_ref[0, c, :, :] for c in range(c_in)]
    xp = [a + skb_ref[o] for o, a in enumerate(_mix(skw_ref, xs))]
    mask = _tile_mask(tr, ns_g, tile_elems, s_valid) if masked else None
    _accum_stats(xp, mask, sum_ref, sq_ref)


def _stats2_kernel(x_ref, a1w_ref, c1_ref, w1_ref, b1_ref, sum_ref, sq_ref, *,
                   ns_g, tile_elems, s_valid, masked):
    """Per-channel sum/sumsq of h = conv1(relu(A1 x + c1')) + conv1_b."""
    c_in = x_ref.shape[1]
    tr = x_ref.shape[2]
    xs = [x_ref[0, c, :, :] for c in range(c_in)]
    t = [jnp.maximum(a + c1_ref[o], 0.0) for o, a in enumerate(_mix(a1w_ref, xs))]
    h = [a + b1_ref[j] for j, a in enumerate(_mix(w1_ref, t))]
    mask = _tile_mask(tr, ns_g, tile_elems, s_valid) if masked else None
    _accum_stats(h, mask, sum_ref, sq_ref)


def _apply_kernel(x_ref, a1w_ref, c1_ref, w1f_ref, b1f_ref, w2_ref, wr_ref,
                  bo_ref, o_ref):
    """out = conv2(relu(W1f relu(A1 x + c1') + b1f)) + Wr x + b_out."""
    c_in = x_ref.shape[1]
    c_out = o_ref.shape[1]
    xs = [x_ref[0, c, :, :] for c in range(c_in)]
    t = [jnp.maximum(a + c1_ref[o], 0.0) for o, a in enumerate(_mix(a1w_ref, xs))]
    u = [jnp.maximum(a + b1f_ref[j], 0.0) for j, a in enumerate(_mix(w1f_ref, t))]
    y = _mix(w2_ref, u)
    s = _mix(wr_ref, xs)
    for o in range(c_out):
        o_ref[0, o, :, :] = (y[o] + s[o] + bo_ref[o]).astype(o_ref.dtype)


# --------------------------------------------------------------------------
# Wrapper
# --------------------------------------------------------------------------
def _vmem_limit_bytes():
    try:
        cap = getattr(pltpu.get_tpu_info(), "vmem_capacity_bytes", None)
    except Exception:
        cap = None
    if not cap:
        return 32 * 1024 * 1024  # safe for v7x (64 MiB physical VMEM)
    return int(min(max(cap // 2, 16 * 1024 * 1024), 64 * 1024 * 1024))


def _choose_tiling(S, max_tile_s):
    """Rows of a (R,128)-packed spatial axis and the per-tile row count TR.

    Guarantees TR == R (single tile) or TR % 8 == 0 with TR | R, never a
    narrow / misaligned tile.
    """
    rows = pl.cdiv(S, 128)
    max_rows = max(8, max_tile_s // 128)
    if rows <= max_rows:
        return rows, rows
    rows = ((rows + 7) // 8) * 8
    tr = (max_rows // 8) * 8
    while rows % tr != 0:
        tr -= 8
    return rows, tr


def resnet_old_forward(x, params, *, max_tile_s=None):
    """x: (N, C, D, H, W) f32 -> (N, Cout, D, H, W) f32 (training-mode BN)."""
    N, C, D, H, W = x.shape
    hidden = params["conv1_w"].shape[0]
    Cout = params["conv2_w"].shape[0]
    S = D * H * W
    M = N * S
    f32 = jnp.float32

    vmem_limit = _vmem_limit_bytes()
    if max_tile_s is None:
        # double-buffered in/out blocks + live intermediates, f32
        per_elem = 4 * (2 * (C + Cout) + 2 * C + 2 * hidden)
        max_tile_s = int(min(max((vmem_limit // 3) // per_elem, 8 * 1024),
                             128 * 1024))

    R, TR = _choose_tiling(S, max_tile_s)
    S_pad = R * 128
    ns = R // TR
    masked = S_pad != S
    G = 2 if (ns % 2 == 0 and ns >= 2) else 1   # feed both TCs on v7x even at N==1
    ns_g = ns // G
    tile_elems = TR * 128

    # Lane-dense packing of the spatial axis; reshape is free on contiguous
    # NCDHW data, padding (if any) is a single cheap HBM copy.
    # TODO(synk): cast to bf16 here (and back at the output) on v5e for ~2x
    # HBM roofline; deviates from the f32 PyTorch numerics so kept off.
    x3 = x.reshape(N, C, S).astype(f32)
    if masked:
        x3 = jnp.pad(x3, ((0, 0), (0, 0), (0, S_pad - S)))
    x4 = x3.reshape(N, C, R, 128)

    smem = pl.BlockSpec(memory_space=pltpu.MemorySpace.SMEM)
    x_stats_spec = pl.BlockSpec((1, C, TR, 128),
                                lambda n, g, s: (n, 0, g * ns_g + s, 0))

    def stats_call(kernel, weights, ch):
        stat_spec = pl.BlockSpec((1, 1, ch, 128), lambda n, g, s: (n, g, 0, 0))
        sums, sqs = pl.pallas_call(
            functools.partial(kernel, ns_g=ns_g, tile_elems=tile_elems,
                              s_valid=S, masked=masked),
            out_shape=(jax.ShapeDtypeStruct((N, G, ch, 128), f32),
                       jax.ShapeDtypeStruct((N, G, ch, 128), f32)),
            grid_spec=pl.GridSpec(
                grid=(N, G, ns_g),
                in_specs=[x_stats_spec] + [smem] * len(weights),
                out_specs=(stat_spec, stat_spec)),
            compiler_params=pltpu.CompilerParams(
                dimension_semantics=("parallel", "parallel", "arbitrary"),
                vmem_limit_bytes=vmem_limit),
            cost_estimate=pl.CostEstimate(
                flops=2 * N * S_pad * C * ch, transcendentals=0,
                bytes_accessed=4 * N * S_pad * C),
        )(x4, *weights)
        mean = jnp.sum(sums, axis=(0, 1, 3)) / M                      # (ch,)
        # TODO(synk): E[x^2]-E[x]^2 can cancel for huge low-variance volumes;
        # switch to a shifted / Welford-style combine if that regime matters.
        var = jnp.maximum(jnp.sum(sqs, axis=(0, 1, 3)) / M - mean * mean, 0.0)
        return mean, var

    # ---- Host-side folding of the tiny linear algebra --------------------
    skw_eff = jnp.eye(C, dtype=f32) + params["skip_w"]                # I + skip_w
    skb = params["skip_b"]

    # Pass 1: batch stats of x_post = (I + skip_w) x + skip_b; fold BN1.
    m1, v1 = stats_call(_stats1_kernel, [skw_eff, skb], C)
    a1 = params["bn1_g"] * jax.lax.rsqrt(v1 + EPS)
    c1 = params["bn1_b"] - a1 * m1
    A1 = a1[:, None] * skw_eff                                        # diag(a1)(I+skip_w)
    c1p = a1 * skb + c1

    # Pass 2: batch stats of h = conv1(relu(A1 x + c1')) + conv1_b; fold BN2.
    m2, v2 = stats_call(_stats2_kernel,
                        [A1, c1p, params["conv1_w"], params["conv1_b"]], hidden)
    a2 = params["bn2_g"] * jax.lax.rsqrt(v2 + EPS)
    c2 = params["bn2_b"] - a2 * m2
    W1f = a2[:, None] * params["conv1_w"]                             # BN2 into conv1
    b1f = a2 * params["conv1_b"] + c2
    if "rskip_w" in params:                                           # C != Cout
        Wr = params["rskip_w"] @ skw_eff
        b_out = params["conv2_b"] + params["rskip_w"] @ skb + params["rskip_b"]
    else:                                                             # identity skip
        Wr = skw_eff
        b_out = params["conv2_b"] + skb

    # Pass 3: apply everything; fully parallel grid, lane-dense output.
    weights3 = [A1, c1p, W1f, b1f, params["conv2_w"], Wr, b_out]
    out = pl.pallas_call(
        _apply_kernel,
        out_shape=jax.ShapeDtypeStruct((N, Cout, R, 128), f32),
        grid_spec=pl.GridSpec(
            grid=(N, ns),
            in_specs=[pl.BlockSpec((1, C, TR, 128), lambda n, s: (n, 0, s, 0))]
                     + [smem] * len(weights3),
            out_specs=pl.BlockSpec((1, Cout, TR, 128), lambda n, s: (n, 0, s, 0))),
        compiler_params=pltpu.CompilerParams(
            dimension_semantics=("parallel", "parallel"),
            vmem_limit_bytes=vmem_limit),
        cost_estimate=pl.CostEstimate(
            flops=2 * N * S_pad * (C * C + C * hidden + hidden * Cout + C * Cout),
            transcendentals=0,
            bytes_accessed=4 * N * S_pad * (C + Cout)),               # this call only
    )(x4, *weights3)

    out = out.reshape(N, Cout, S_pad)
    if masked:
        out = out[:, :, :S]
    return out.reshape(N, Cout, D, H, W)


# --------------------------------------------------------------------------
# Parameters & pure-JAX reference
# --------------------------------------------------------------------------
def make_params(key, channels, output_channels):
    hidden = min(channels, output_channels)        # hidden_channels_conv = 0 path
    ks = jax.random.split(key, 12)
    f = lambda k, shape, s=0.1: (s * jax.random.normal(k, shape)).astype(jnp.float32)
    p = {
        # ResnetOld.skip_block: Conv3d(C, C, k=1); weights stored (Cout, Cin).
        "skip_w": f(ks[0], (channels, channels)),
        "skip_b": f(ks[1], (channels,)),
        # ResBlock3d.layers
        "bn1_g": 1.0 + f(ks[2], (channels,)),
        "bn1_b": f(ks[3], (channels,)),
        "conv1_w": f(ks[4], (hidden, channels)),
        "conv1_b": f(ks[5], (hidden,)),
        "bn2_g": 1.0 + f(ks[6], (hidden,)),
        "bn2_b": f(ks[7], (hidden,)),
        "conv2_w": f(ks[8], (output_channels, hidden)),
        "conv2_b": f(ks[9], (output_channels,)),
    }
    if channels != output_channels:                # ResBlock3d.skip: Conv3d(C, Cout)
        p["rskip_w"] = f(ks[10], (output_channels, channels))
        p["rskip_b"] = f(ks[11], (output_channels,))
    return p


def reference_forward(x, p):
    """Pure-JAX reference with identical math, for verification."""
    N, C, D, H, W = x.shape
    Cout = p["conv2_w"].shape[0]
    xf = jnp.transpose(x, (0, 2, 3, 4, 1)).reshape(-1, C)

    def bn(h, g, b):
        m = jnp.mean(h, axis=0, keepdims=True)
        v = jnp.mean((h - m) ** 2, axis=0, keepdims=True)
        return (h - m) / jnp.sqrt(v + EPS) * g + b

    xp = xf + xf @ p["skip_w"].T + p["skip_b"]
    h = jnp.maximum(bn(xp, p["bn1_g"], p["bn1_b"]), 0.0) @ p["conv1_w"].T + p["conv1_b"]
    h = jnp.maximum(bn(h, p["bn2_g"], p["bn2_b"]), 0.0) @ p["conv2_w"].T + p["conv2_b"]
    if "rskip_w" in p:
        out = h + xp @ p["rskip_w"].T + p["rskip_b"]
    else:
        out = h + xp
    return jnp.transpose(out.reshape(N, D, H, W, Cout), (0, 4, 1, 2, 3))


if __name__ == "__main__":
    key = jax.random.PRNGKey(0)
    k1, k2, kp1, kp2 = jax.random.split(key, 4)

    # Case 1: conv right-skip (C != Cout); S = 16^3 = 4096 -> 32 rows of 128,
    # small max_tile_s forces 4 spatial tiles so the multi-tile stats
    # accumulation and the G = 2 s-group split are exercised.
    x1 = jax.random.normal(k1, (2, 4, 16, 16, 16), dtype=jnp.float32)
    p1 = make_params(kp1, 4, 8)
    out1 = jax.block_until_ready(resnet_old_forward(x1, p1, max_tile_s=1024))
    ref1 = reference_forward(x1, p1)
    assert out1.shape == (2, 8, 16, 16, 16), out1.shape
    err1 = float(jnp.max(jnp.abs(out1 - ref1)))
    assert err1 < 5e-4, f"case1 mismatch vs reference: {err1}"

    # Case 2: identity right-skip (C == Cout) and a ragged spatial size
    # (S = 210 -> zero-padded to 2x128 with masked statistics).
    x2 = jax.random.normal(k2, (1, 3, 5, 6, 7), dtype=jnp.float32)
    p2 = make_params(kp2, 3, 3)
    out2 = jax.block_until_ready(resnet_old_forward(x2, p2))
    ref2 = reference_forward(x2, p2)
    assert out2.shape == (1, 3, 5, 6, 7), out2.shape
    err2 = float(jnp.max(jnp.abs(out2 - ref2)))
    assert err2 < 5e-4, f"case2 mismatch vs reference: {err2}"

    print("KERNEL_OK")
</pallas_src>

<mosaic_0001>
module attributes {stable_mosaic.version = 11 : i64} {
  func.func @_stats1_kernel(%arg0: i32, %arg1: i32, %arg2: i32, %arg3: memref<1x4x8x128xf32, #tpu.memory_space<vmem>>, %arg4: memref<4x4xf32, #tpu.memory_space<smem>>, %arg5: memref<4xf32, #tpu.memory_space<smem>>, %arg6: memref<1x1x4x128xf32, #tpu.memory_space<vmem>>, %arg7: memref<1x1x4x128xf32, #tpu.memory_space<vmem>>) attributes {dimension_semantics = [#tpu.dimension_semantics<parallel>, #tpu.dimension_semantics<parallel>, #tpu.dimension_semantics<arbitrary>], iteration_bounds = array<i64: 2, 2, 2>, scalar_prefetch = 0 : i64, scratch_operands = 0 : i64, tpu.core_type = #tpu.core_type<tc>, window_params = [{transform_indices = @transform_0, window_bounds = array<i64: 1, 4, 8, 128>}, {transform_indices = @transform_1, window_bounds = array<i64: 4, 4>}, {transform_indices = @transform_2, window_bounds = array<i64: 4>}, {transform_indices = @transform_3, window_bounds = array<i64: 1, 1, 4, 128>}, {transform_indices = @transform_4, window_bounds = array<i64: 1, 1, 4, 128>}]} {
    %c0 = arith.constant 0 : index
    %c0_0 = arith.constant 0 : index
    %c0_1 = arith.constant 0 : index
    %c0_2 = arith.constant 0 : index
    %0 = vector.load %arg3[%c0, %c0_0, %c0_1, %c0_2] : memref<1x4x8x128xf32, #tpu.memory_space<vmem>>, vector<1x1x8x128xf32>
    %1 = vector.shape_cast %0 : vector<1x1x8x128xf32> to vector<8x128xf32>
    %c0_3 = arith.constant 0 : index
    %c1 = arith.constant 1 : index
    %c0_4 = arith.constant 0 : index
    %c0_5 = arith.constant 0 : index
    %2 = vector.load %arg3[%c0_3, %c1, %c0_4, %c0_5] : memref<1x4x8x128xf32, #tpu.memory_space<vmem>>, vector<1x1x8x128xf32>
    %3 = vector.shape_cast %2 : vector<1x1x8x128xf32> to vector<8x128xf32>
    %c0_6 = arith.constant 0 : index
    %c2 = arith.constant 2 : index
    %c0_7 = arith.constant 0 : index
    %c0_8 = arith.constant 0 : index
    %4 = vector.load %arg3[%c0_6, %c2, %c0_7, %c0_8] : memref<1x4x8x128xf32, #tpu.memory_space<vmem>>, vector<1x1x8x128xf32>
    %5 = vector.shape_cast %4 : vector<1x1x8x128xf32> to vector<8x128xf32>
    %c0_9 = arith.constant 0 : index
    %c3 = arith.constant 3 : index
    %c0_10 = arith.constant 0 : index
    %c0_11 = arith.constant 0 : index
    %6 = vector.load %arg3[%c0_9, %c3, %c0_10, %c0_11] : memref<1x4x8x128xf32, #tpu.memory_space<vmem>>, vector<1x1x8x128xf32>
    %7 = vector.shape_cast %6 : vector<1x1x8x128xf32> to vector<8x128xf32>
    %c0_12 = arith.constant 0 : index
    %c0_13 = arith.constant 0 : index
    %8 = memref.load %arg4[%c0_12, %c0_13] : memref<4x4xf32, #tpu.memory_space<smem>>
    %9 = vector.broadcast %8 : f32 to vector<8x128xf32>
    %10 = arith.mulf %9, %1 : vector<8x128xf32>
    %c0_14 = arith.constant 0 : index
    %c1_15 = arith.constant 1 : index
    %11 = memref.load %arg4[%c0_14, %c1_15] : memref<4x4xf32, #tpu.memory_space<smem>>
    %12 = vector.broadcast %11 : f32 to vector<8x128xf32>
    %13 = arith.mulf %12, %3 : vector<8x128xf32>
    %14 = arith.addf %10, %13 : vector<8x128xf32>
    %c0_16 = arith.constant 0 : index
    %c2_17 = arith.constant 2 : index
    %15 = memref.load %arg4[%c0_16, %c2_17] : memref<4x4xf32, #tpu.memory_space<smem>>
    %16 = vector.broadcast %15 : f32 to vector<8x128xf32>
    %17 = arith.mulf %16, %5 : vector<8x128xf32>
    %18 = arith.addf %14, %17 : vector<8x128xf32>
    %c0_18 = arith.constant 0 : index
    %c3_19 = arith.constant 3 : index
    %19 = memref.load %arg4[%c0_18, %c3_19] : memref<4x4xf32, #tpu.memory_space<smem>>
    %20 = vector.broadcast %19 : f32 to vector<8x128xf32>
    %21 = arith.mulf %20, %7 : vector<8x128xf32>
    %22 = arith.addf %18, %21 : vector<8x128xf32>
    %c1_20 = arith.constant 1 : index
    %c0_21 = arith.constant 0 : index
    %23 = memref.load %arg4[%c1_20, %c0_21] : memref<4x4xf32, #tpu.memory_space<smem>>
    %24 = vector.broadcast %23 : f32 to vector<8x128xf32>
    %25 = arith.mulf %24, %1 : vector<8x128xf32>
    %c1_22 = arith.constant 1 : index
    %c1_23 = arith.constant 1 : index
    %26 = memref.load %arg4[%c1_22, %c1_23] : memref<4x4xf32, #tpu.memory_space<smem>>
    %27 = vector.broadcast %26 : f32 to vector<8x128xf32>
    %28 = arith.mulf %27, %3 : vector<8x128xf32>
    %29 = arith.addf %25, %28 : vector<8x128xf32>
    %c1_24 = arith.constant 1 : index
    %c2_25 = arith.constant 2 : index
    %30 = memref.load %arg4[%c1_24, %c2_25] : memref<4x4xf32, #tpu.memory_space<smem>>
    %31 = vector.broadcast %30 : f32 to vector<8x128xf32>
    %32 = arith.mulf %31, %5 : vector<8x128xf32>
    %33 = arith.addf %29, %32 : vector<8x128xf32>
    %c1_26 = arith.constant 1 : index
    %c3_27 = arith.constant 3 : index
    %34 = memref.load %arg4[%c1_26, %c3_27] : memref<4x4xf32, #tpu.memory_space<smem>>
    %35 = vector.broadcast %34 : f32 to vector<8x128xf32>
    %36 = arith.mulf %35, %7 : vector<8x128xf32>
    %37 = arith.addf %33, %36 : vector<8x128xf32>
    %c2_28 = arith.constant 2 : index
    %c0_29 = arith.constant 0 : index
    %38 = memref.load %arg4[%c2_28, %c0_29] : memref<4x4xf32, #tpu.memory_space<smem>>
    %39 = vector.broadcast %38 : f32 to vector<8x128xf32>
    %40 = arith.mulf %39, %1 : vector<8x128xf32>
    %c2_30 = arith.constant 2 : index
    %c1_31 = arith.constant 1 : index
    %41 = memref.load %arg4[%c2_30, %c1_31] : memref<4x4xf32, #tpu.memory_space<smem>>
    %42 = vector.broadcast %41 : f32 to vector<8x128xf32>
    %43 = arith.mulf %42, %3 : vector<8x128xf32>
    %44 = arith.addf %40, %43 : vector<8x128xf32>
    %c2_32 = arith.constant 2 : index
    %c2_33 = arith.constant 2 : index
    %45 = memref.load %arg4[%c2_32, %c2_33] : memref<4x4xf32, #tpu.memory_space<smem>>
    %46 = vector.broadcast %45 : f32 to vector<8x128xf32>
    %47 = arith.mulf %46, %5 : vector<8x128xf32>
    %48 = arith.addf %44, %47 : vector<8x128xf32>
    %c2_34 = arith.constant 2 : index
    %c3_35 = arith.constant 3 : index
    %49 = memref.load %arg4[%c2_34, %c3_35] : memref<4x4xf32, #tpu.memory_space<smem>>
    %50 = vector.broadcast %49 : f32 to vector<8x128xf32>
    %51 = arith.mulf %50, %7 : vector<8x128xf32>
    %52 = arith.addf %48, %51 : vector<8x128xf32>
    %c3_36 = arith.constant 3 : index
    %c0_37 = arith.constant 0 : index
    %53 = memref.load %arg4[%c3_36, %c0_37] : memref<4x4xf32, #tpu.memory_space<smem>>
    %54 = vector.broadcast %53 : f32 to vector<8x128xf32>
    %55 = arith.mulf %54, %1 : vector<8x128xf32>
    %c3_38 = arith.constant 3 : index
    %c1_39 = arith.constant 1 : index
    %56 = memref.load %arg4[%c3_38, %c1_39] : memref<4x4xf32, #tpu.memory_space<smem>>
    %57 = vector.broadcast %56 : f32 to vector<8x128xf32>
    %58 = arith.mulf %57, %3 : vector<8x128xf32>
    %59 = arith.addf %55, %58 : vector<8x128xf32>
    %c3_40 = arith.constant 3 : index
    %c2_41 = arith.constant 2 : index
    %60 = memref.load %arg4[%c3_40, %c2_41] : memref<4x4xf32, #tpu.memory_space<smem>>
    %61 = vector.broadcast %60 : f32 to vector<8x128xf32>
    %62 = arith.mulf %61, %5 : vector<8x128xf32>
    %63 = arith.addf %59, %62 : vector<8x128xf32>
    %c3_42 = arith.constant 3 : index
    %c3_43 = arith.constant 3 : index
    %64 = memref.load %arg4[%c3_42, %c3_43] : memref<4x4xf32, #tpu.memory_space<smem>>
    %65 = vector.broadcast %64 : f32 to vector<8x128xf32>
    %66 = arith.mulf %65, %7 : vector<8x128xf32>
    %67 = arith.addf %63, %66 : vector<8x128xf32>
    %c0_44 = arith.constant 0 : index
    %68 = memref.load %arg5[%c0_44] : memref<4xf32, #tpu.memory_space<smem>>
    %69 = vector.broadcast %68 : f32 to vector<8x128xf32>
    %70 = arith.addf %22, %69 : vector<8x128xf32>
    %c1_45 = arith.constant 1 : index
    %71 = memref.load %arg5[%c1_45] : memref<4xf32, #tpu.memory_space<smem>>
    %72 = vector.broadcast %71 : f32 to vector<8x128xf32>
    %73 = arith.addf %37, %72 : vector<8x128xf32>
    %c2_46 = arith.constant 2 : index
    %74 = memref.load %arg5[%c2_46] : memref<4xf32, #tpu.memory_space<smem>>
    %75 = vector.broadcast %74 : f32 to vector<8x128xf32>
    %76 = arith.addf %52, %75 : vector<8x128xf32>
    %c3_47 = arith.constant 3 : index
    %77 = memref.load %arg5[%c3_47] : memref<4xf32, #tpu.memory_space<smem>>
    %78 = vector.broadcast %77 : f32 to vector<8x128xf32>
    %79 = arith.addf %67, %78 : vector<8x128xf32>
    %c0_i32 = arith.constant 0 : i32
    %80 = arith.cmpi eq, %arg2, %c0_i32 : i32
    %81 = arith.extui %80 : i1 to i32
    %c0_i32_48 = arith.constant 0 : i32
    %82 = arith.cmpi ne, %81, %c0_i32_48 : i32
    scf.if %82 {
      %cst_120 = arith.constant 0.000000e+00 : f32
      %143 = vector.broadcast %cst_120 : f32 to vector<1x1x4x128xf32>
      %c0_121 = arith.constant 0 : index
      %c0_122 = arith.constant 0 : index
      %c0_123 = arith.constant 0 : index
      %c0_124 = arith.constant 0 : index
      %144 = vector.load %arg6[%c0_121, %c0_122, %c0_123, %c0_124] : memref<1x1x4x128xf32, #tpu.memory_space<vmem>>, vector<1x1x4x128xf32>
      tpu.vector_store %arg6[%c0_121, %c0_122, %c0_123, %c0_124], %143 {strides = array<i32>} : memref<1x1x4x128xf32, #tpu.memory_space<vmem>>, vector<1x1x4x128xf32>,
      %cst_125 = arith.constant 0.000000e+00 : f32
      %145 = vector.broadcast %cst_125 : f32 to vector<1x1x4x128xf32>
      %c0_126 = arith.constant 0 : index
      %c0_127 = arith.constant 0 : index
      %c0_128 = arith.constant 0 : index
      %c0_129 = arith.constant 0 : index
      %146 = vector.load %arg7[%c0_126, %c0_127, %c0_128, %c0_129] : memref<1x1x4x128xf32, #tpu.memory_space<vmem>>, vector<1x1x4x128xf32>
      tpu.vector_store %arg7[%c0_126, %c0_127, %c0_128, %c0_129], %145 {strides = array<i32>} : memref<1x1x4x128xf32, #tpu.memory_space<vmem>>, vector<1x1x4x128xf32>,
    } else {
    }
    %83 = arith.mulf %70, %70 : vector<8x128xf32>
    %c0_49 = arith.constant 0 : index
    %c0_50 = arith.constant 0 : index
    %c0_51 = arith.constant 0 : index
    %c0_52 = arith.constant 0 : index
    %84 = vector.load %arg6[%c0_49, %c0_50, %c0_51, %c0_52] : memref<1x1x4x128xf32, #tpu.memory_space<vmem>>, vector<1x1x1x128xf32>
    %85 = vector.shape_cast %84 : vector<1x1x1x128xf32> to vector<128xf32>
    %cst = arith.constant dense<0.000000e+00> : vector<128xf32>
    %86 = vector.multi_reduction <add>, %70, %cst [0] : vector<8x128xf32> to vector<128xf32>
    %87 = arith.addf %85, %86 : vector<128xf32>
    %c0_53 = arith.constant 0 : index
    %c0_54 = arith.constant 0 : index
    %c0_55 = arith.constant 0 : index
    %c0_56 = arith.constant 0 : index
    %88 = vector.load %arg6[%c0_53, %c0_54, %c0_55, %c0_56] : memref<1x1x4x128xf32, #tpu.memory_space<vmem>>, vector<1x1x1x128xf32>
    %89 = vector.shape_cast %88 : vector<1x1x1x128xf32> to vector<128xf32>
    %90 = vector.shape_cast %87 : vector<128xf32> to vector<1x1x1x128xf32>
    tpu.vector_store %arg6[%c0_53, %c0_54, %c0_55, %c0_56], %90 {strides = array<i32>} : memref<1x1x4x128xf32, #tpu.memory_space<vmem>>, vector<1x1x1x128xf32>,
    %c0_57 = arith.constant 0 : index
    %c0_58 = arith.constant 0 : index
    %c0_59 = arith.constant 0 : index
    %c0_60 = arith.constant 0 : index
    %91 = vector.load %arg7[%c0_57, %c0_58, %c0_59, %c0_60] : memref<1x1x4x128xf32, #tpu.memory_space<vmem>>, vector<1x1x1x128xf32>
    %92 = vector.shape_cast %91 : vector<1x1x1x128xf32> to vector<128xf32>
    %cst_61 = arith.constant dense<0.000000e+00> : vector<128xf32>
    %93 = vector.multi_reduction <add>, %83, %cst_61 [0] : vector<8x128xf32> to vector<128xf32>
    %94 = arith.addf %92, %93 : vector<128xf32>
    %c0_62 = arith.constant 0 : index
    %c0_63 = arith.constant 0 : index
    %c0_64 = arith.constant 0 : index
    %c0_65 = arith.constant 0 : index
    %95 = vector.load %arg7[%c0_62, %c0_63, %c0_64, %c0_65] : memref<1x1x4x128xf32, #tpu.memory_space<vmem>>, vector<1x1x1x128xf32>
    %96 = vector.shape_cast %95 : vector<1x1x1x128xf32> to vector<128xf32>
    %97 = vector.shape_cast %94 : vector<128xf32> to vector<1x1x1x128xf32>
    tpu.vector_store %arg7[%c0_62, %c0_63, %c0_64, %c0_65], %97 {strides = array<i32>} : memref<1x1x4x128xf32, #tpu.memory_space<vmem>>, vector<1x1x1x128xf32>,
    %98 = arith.mulf %73, %73 : vector<8x128xf32>
    %c0_66 = arith.constant 0 : index
    %c0_67 = arith.constant 0 : index
    %c1_68 = arith.constant 1 : index
    %c0_69 = arith.constant 0 : index
    %99 = vector.load %arg6[%c0_66, %c0_67, %c1_68, %c0_69] : memref<1x1x4x128xf32, #tpu.memory_space<vmem>>, vector<1x1x1x128xf32>
    %100 = vector.shape_cast %99 : vector<1x1x1x128xf32> to vector<128xf32>
    %cst_70 = arith.constant dense<0.000000e+00> : vector<128xf32>
    %101 = vector.multi_reduction <add>, %73, %cst_70 [0] : vector<8x128xf32> to vector<128xf32>
    %102 = arith.addf %100, %101 : vector<128xf32>
    %c0_71 = arith.constant 0 : index
    %c0_72 = arith.constant 0 : index
    %c1_73 = arith.constant 1 : index
    %c0_74 = arith.constant 0 : index
    %103 = vector.load %arg6[%c0_71, %c0_72, %c1_73, %c0_74] : memref<1x1x4x128xf32, #tpu.memory_space<vmem>>, vector<1x1x1x128xf32>
    %104 = vector.shape_cast %103 : vector<1x1x1x128xf32> to vector<128xf32>
    %105 = vector.shape_cast %102 : vector<128xf32> to vector<1x1x1x128xf32>
    tpu.vector_store %arg6[%c0_71, %c0_72, %c1_73, %c0_74], %105 {strides = array<i32>} : memref<1x1x4x128xf32, #tpu.memory_space<vmem>>, vector<1x1x1x128xf32>,
    %c0_75 = arith.constant 0 : index
    %c0_76 = arith.constant 0 : index
    %c1_77 = arith.constant 1 : index
    %c0_78 = arith.constant 0 : index
    %106 = vector.load %arg7[%c0_75, %c0_76, %c1_77, %c0_78] : memref<1x1x4x128xf32, #tpu.memory_space<vmem>>, vector<1x1x1x128xf32>
    %107 = vector.shape_cast %106 : vector<1x1x1x128xf32> to vector<128xf32>
    %cst_79 = arith.constant dense<0.000000e+00> : vector<128xf32>
    %108 = vector.multi_reduction <add>, %98, %cst_79 [0] : vector<8x128xf32> to vector<128xf32>
    %109 = arith.addf %107, %108 : vector<128xf32>
    %c0_80 = arith.constant 0 : index
    %c0_81 = arith.constant 0 : index
    %c1_82 = arith.constant 1 : index
    %c0_83 = arith.constant 0 : index
    %110 = vector.load %arg7[%c0_80, %c0_81, %c1_82, %c0_83] : memref<1x1x4x128xf32, #tpu.memory_space<vmem>>, vector<1x1x1x128xf32>
    %111 = vector.shape_cast %110 : vector<1x1x1x128xf32> to vector<128xf32>
    %112 = vector.shape_cast %109 : vector<128xf32> to vector<1x1x1x128xf32>
    tpu.vector_store %arg7[%c0_80, %c0_81, %c1_82, %c0_83], %112 {strides = array<i32>} : memref<1x1x4x128xf32, #tpu.memory_space<vmem>>, vector<1x1x1x128xf32>,
    %113 = arith.mulf %76, %76 : vector<8x128xf32>
    %c0_84 = arith.constant 0 : index
    %c0_85 = arith.constant 0 : index
    %c2_86 = arith.constant 2 : index
    %c0_87 = arith.constant 0 : index
    %114 = vector.load %arg6[%c0_84, %c0_85, %c2_86, %c0_87] : memref<1x1x4x128xf32, #tpu.memory_space<vmem>>, vector<1x1x1x128xf32>
    %115 = vector.shape_cast %114 : vector<1x1x1x128xf32> to vector<128xf32>
    %cst_88 = arith.constant dense<0.000000e+00> : vector<128xf32>
    %116 = vector.multi_reduction <add>, %76, %cst_88 [0] : vector<8x128xf32> to vector<128xf32>
    %117 = arith.addf %115, %116 : vector<128xf32>
    %c0_89 = arith.constant 0 : index
    %c0_90 = arith.constant 0 : index
    %c2_91 = arith.constant 2 : index
    %c0_92 = arith.constant 0 : index
    %118 = vector.load %arg6[%c0_89, %c0_90, %c2_91, %c0_92] : memref<1x1x4x128xf32, #tpu.memory_space<vmem>>, vector<1x1x1x128xf32>
    %119 = vector.shape_cast %118 : vector<1x1x1x128xf32> to vector<128xf32>
    %120 = vector.shape_cast %117 : vector<128xf32> to vector<1x1x1x128xf32>
    tpu.vector_store %arg6[%c0_89, %c0_90, %c2_91, %c0_92], %120 {strides = array<i32>} : memref<1x1x4x128xf32, #tpu.memory_space<vmem>>, vector<1x1x1x128xf32>,
    %c0_93 = arith.constant 0 : index
    %c0_94 = arith.constant 0 : index
    %c2_95 = arith.constant 2 : index
    %c0_96 = arith.constant 0 : index
    %121 = vector.load %arg7[%c0_93, %c0_94, %c2_95, %c0_96] : memref<1x1x4x128xf32, #tpu.memory_space<vmem>>, vector<1x1x1x128xf32>
    %122 = vector.shape_cast %121 : vector<1x1x1x128xf32> to vector<128xf32>
    %cst_97 = arith.constant dense<0.000000e+00> : vector<128xf32>
    %123 = vector.multi_reduction <add>, %113, %cst_97 [0] : vector<8x128xf32> to vector<128xf32>
    %124 = arith.addf %122, %123 : vector<128xf32>
    %c0_98 = arith.constant 0 : index
    %c0_99 = arith.constant 0 : index
    %c2_100 = arith.constant 2 : index
    %c0_101 = arith.constant 0 : index
    %125 = vector.load %arg7[%c0_98, %c0_99, %c2_100, %c0_101] : memref<1x1x4x128xf32, #tpu.memory_space<vmem>>, vector<1x1x1x128xf32>
    %126 = vector.shape_cast %125 : vector<1x1x1x128xf32> to vector<128xf32>
    %127 = vector.shape_cast %124 : vector<128xf32> to vector<1x1x1x128xf32>
    tpu.vector_store %arg7[%c0_98, %c0_99, %c2_100, %c0_101], %127 {strides = array<i32>} : memref<1x1x4x128xf32, #tpu.memory_space<vmem>>, vector<1x1x1x128xf32>,
    %128 = arith.mulf %79, %79 : vector<8x128xf32>
    %c0_102 = arith.constant 0 : index
    %c0_103 = arith.constant 0 : index
    %c3_104 = arith.constant 3 : index
    %c0_105 = arith.constant 0 : index
    %129 = vector.load %arg6[%c0_102, %c0_103, %c3_104, %c0_105] : memref<1x1x4x128xf32, #tpu.memory_space<vmem>>, vector<1x1x1x128xf32>
    %130 = vector.shape_cast %129 : vector<1x1x1x128xf32> to vector<128xf32>
    %cst_106 = arith.constant dense<0.000000e+00> : vector<128xf32>
    %131 = vector.multi_reduction <add>, %79, %cst_106 [0] : vector<8x128xf32> to vector<128xf32>
    %132 = arith.addf %130, %131 : vector<128xf32>
    %c0_107 = arith.constant 0 : index
    %c0_108 = arith.constant 0 : index
    %c3_109 = arith.constant 3 : index
    %c0_110 = arith.constant 0 : index
    %133 = vector.load %arg6[%c0_107, %c0_108, %c3_109, %c0_110] : memref<1x1x4x128xf32, #tpu.memory_space<vmem>>, vector<1x1x1x128xf32>
    %134 = vector.shape_cast %133 : vector<1x1x1x128xf32> to vector<128xf32>
    %135 = vector.shape_cast %132 : vector<128xf32> to vector<1x1x1x128xf32>
    tpu.vector_store %arg6[%c0_107, %c0_108, %c3_109, %c0_110], %135 {strides = array<i32>} : memref<1x1x4x128xf32, #tpu.memory_space<vmem>>, vector<1x1x1x128xf32>,
    %c0_111 = arith.constant 0 : index
    %c0_112 = arith.constant 0 : index
    %c3_113 = arith.constant 3 : index
    %c0_114 = arith.constant 0 : index
    %136 = vector.load %arg7[%c0_111, %c0_112, %c3_113, %c0_114] : memref<1x1x4x128xf32, #tpu.memory_space<vmem>>, vector<1x1x1x128xf32>
    %137 = vector.shape_cast %136 : vector<1x1x1x128xf32> to vector<128xf32>
    %cst_115 = arith.constant dense<0.000000e+00> : vector<128xf32>
    %138 = vector.multi_reduction <add>, %128, %cst_115 [0] : vector<8x128xf32> to vector<128xf32>
    %139 = arith.addf %137, %138 : vector<128xf32>
    %c0_116 = arith.constant 0 : index
    %c0_117 = arith.constant 0 : index
    %c3_118 = arith.constant 3 : index
    %c0_119 = arith.constant 0 : index
    %140 = vector.load %arg7[%c0_116, %c0_117, %c3_118, %c0_119] : memref<1x1x4x128xf32, #tpu.memory_space<vmem>>, vector<1x1x1x128xf32>
    %141 = vector.shape_cast %140 : vector<1x1x1x128xf32> to vector<128xf32>
    %142 = vector.shape_cast %139 : vector<128xf32> to vector<1x1x1x128xf32>
    tpu.vector_store %arg7[%c0_116, %c0_117, %c3_118, %c0_119], %142 {strides = array<i32>} : memref<1x1x4x128xf32, #tpu.memory_space<vmem>>, vector<1x1x1x128xf32>,
    return
  }
  func.func @transform_0(%arg0: i32, %arg1: i32, %arg2: i32) -> (i32, i32, i32, i32) {
    %c2_i32 = arith.constant 2 : i32
    %0 = arith.muli %arg1, %c2_i32 : i32
    %1 = arith.addi %0, %arg2 : i32
    %c0_i32 = arith.constant 0 : i32
    %c0_i32_0 = arith.constant 0 : i32
    %c0_i32_1 = arith.constant 0 : i32
    return %arg0, %c0_i32, %1, %c0_i32_0 : i32, i32, i32, i32
  }
  func.func @transform_1(%arg0: i32, %arg1: i32, %arg2: i32) -> (i32, i32) {
    %c0_i32 = arith.constant 0 : i32
    %c0_i32_0 = arith.constant 0 : i32
    %c0_i32_1 = arith.constant 0 : i32
    return %c0_i32, %c0_i32_0 : i32, i32
  }
  func.func @transform_2(%arg0: i32, %arg1: i32, %arg2: i32) -> i32 {
    %c0_i32 = arith.constant 0 : i32
    %c0_i32_0 = arith.constant 0 : i32
    return %c0_i32 : i32
  }
  func.func @transform_3(%arg0: i32, %arg1: i32, %arg2: i32) -> (i32, i32, i32, i32) {
    %c0_i32 = arith.constant 0 : i32
    %c0_i32_0 = arith.constant 0 : i32
    %c0_i32_1 = arith.constant 0 : i32
    return %arg0, %arg1, %c0_i32, %c0_i32_0 : i32, i32, i32, i32
  }
  func.func @transform_4(%arg0: i32, %arg1: i32, %arg2: i32) -> (i32, i32, i32, i32) {
    %c0_i32 = arith.constant 0 : i32
    %c0_i32_0 = arith.constant 0 : i32
    %c0_i32_1 = arith.constant 0 : i32
    return %arg0, %arg1, %c0_i32, %c0_i32_0 : i32, i32, i32, i32
  }
}

</mosaic_0001>

<bundles_post_ra>
// kernel: tpu_custom_call.1
= control target key start
LH: loop header
LB: loop body
LE: loop exit
PB: predicated region body
PF: predicated region fallthrough
CT: control target
= control target key end

     0   :  { %s1509_s0 = inlined_call_operand.hbm [shape: f32[2,4,32,128], index: 0, kind: input, shape index: {}]   ;;  %s1510_s1 = inlined_call_operand.hbm [shape: f32[4,4], index: 1, kind: input, shape index: {}]   ;;  %s1511_s2 = inlined_call_operand.vmem [shape: f32[4], index: 2, kind: input, shape index: {}]   ;;  %s1512_s3 = inlined_call_operand.hbm [shape: f32[2,2,4,128], index: 3, kind: output, shape index: {0}]   ;;  %s1513_s4 = inlined_call_operand.hbm [shape: f32[2,2,4,128], index: 4, kind: output, shape index: {1}]  }
   0x1   :  { %1530 = sst [smem:[#allocation25_spill]] %s1510_s1 }
   0x2   :  { %1531 = sst [smem:[#allocation26_spill]] %s1511_s2 }
   0x3   :  { %1532 = sst [smem:[#allocation27_spill]] %s1512_s3 }
   0x4   :  { %1533 = sst [smem:[#allocation28_spill]] %s1513_s4 }
   0x5   :  { %10 = vsyncpa [#allocation3], 0 }
   0x6   :  { %12 = vsyncpa [#allocation3 + $0x1], 0 }
   0x7   :  { %13 = vsyncpa [#allocation5], 0 }
   0x8   :  { %14 = vsyncpa [#allocation6], 0 }
   0x9   :  { %15 = vsyncpa [#allocation4], 0 }
   0xa   :  { %17 = vsyncpa [#allocation4 + $0x1], 0 }
   0xb   :  { %18 = vsyncpa [#allocation11], 0 }
   0xc   :  { %20 = vsyncpa [#allocation11 + $0x1], 0  ;;  %s1102_s15 = smov 0   ;;  %s1104_s16 = smov 0  }
   0xd   :  { %s1106_s17 = smov 0   ;;  %s1108_s18 = smov 0  }
   0xe   :  { %s1110_s19 = smov 0   ;;  %s1112_s20 = smov 0  }
   0xf   :  { %s1114_s21 = smov 0   ;;  %s1116_s22 = smov 0  }
  0x10   :  { %s1118_s23 = smov 0   ;;  %s1120_s24 = smov 0  }
  0x11   :  { %s1122_s25 = smov 0   ;;  %s1124_s26 = smov 0  }
  0x12   :  { %s1126_s27 = smov 0  }
  0x13 LB: > { %1534 = sst [smem:[#allocation17_spill]] %s1018_s15  ;;  %s634_s28 = sadd.s32 4294967295, %s1066_s27   ;;  %s1066_s27 = sphi %s1126_s27, %s26_s27   ;;  %s1062_s26 = sphi %s1124_s26, %s1578_s26   ;;  %s1058_s25 = sphi %s1122_s25, %s1577_s25   ;;  %s1054_s24 = sphi %s1120_s24, %s1566_s24   ;;  %s1050_s23 = sphi %s1118_s23, %s1576_s23   ;;  %s1046_s22 = sphi %s1116_s22, %s1575_s22   ;;  %s1042_s21 = sphi %s1114_s21, %s1565_s21   ;;  %s1038_s20 = sphi %s1112_s20, %s1574_s20   ;;  %s1034_s19 = sphi %s1110_s19, %s1573_s19   ;;  %s1030_s18 = sphi %s1108_s18, %s1572_s18   ;;  %s1026_s17 = sphi %s1106_s17, %s1571_s17   ;;  %s1022_s16 = sphi %s1104_s16, %s1570_s16   ;;  %s1018_s15 = sphi %s1102_s15, %s1569_s15  }
  0x14   : > { %1535 = sst [smem:[#allocation18_spill]] %s1054_s24  ;;  %s635_s29 = sadd.s32 4294967294, %s1066_s27  }
  0x15   : > { %1536 = sst [smem:[#allocation19_spill]] %s1066_s27  ;;  %p65_p0 = scmp.ne.s32.totalorder %s1038_s20, %s1034_s19 }
  0x16   : > { %p66_p1 = scmp.eq.s32.totalorder %s1066_s27, 0  ;;  %p71_p2 = scmp.ne.s32.totalorder %s1034_s19, %s1030_s18 }
  0x17   : > { %p1172_p3 = scmp.eq.s32.totalorder %s634_s28, 0  ;;  %p138_p5 = scmp.ne.s32.totalorder %s1026_s17, %s1022_s16 }
  0x18   : > { %p1177_p4 = por %p66_p1, %p65_p0  ;;  %p139_p7 = scmp.eq.s32.totalorder %s634_s28, 7 }
  0x19   : > { %s1537_s5 = scalar_select %p1172_p3, 1, 0 }
  0x1a   : > { %p1185_p6 = por %p1172_p3, %p71_p2  ;;  %p144_p8 = scmp.ne.s32.totalorder %s1022_s16, %s1018_s15 }
  0x1b   : > { %p145_p9 = scmp.eq.s32.totalorder %s635_s29, 7  ;;  %p1191_p10 = por %p139_p7, %p138_p5 }
  0x1c   : > { %s1539_s8 = scalar_select %p1185_p6, 1, 0 }
  0x1d   : > { %s1540_s9 = scalar_select %p1191_p10, 1, 0 }
  0x1e   : > { %p638_p11 = scmp.ge.s32.totalorder %s1066_s27, 1  ;;  %p1196_p12 = por %p145_p9, %p144_p8 }
  0x1f   : > { %1541 = sst [smem:[#allocation20_spill]] %s1540_s9  ;;  %p180_p13 = scmp.lt.s32.totalorder %s1066_s27, 9 }
  0x20   : > { %s1542_s10 = scalar_select %p1196_p12, 1, 0 }
  0x21   : > { %p1201_p0 = pnand %p638_p11, %p180_p13  ;;  %p716_p1 = scmp.lt.s32.totalorder %s1066_s27, 8 }
  0x22   : > { %1543 = sst [smem:[#allocation21_spill]] %s1542_s10  ;;  %s1545_s2 = sld [smem:[#allocation26_spill]] }
  0x23   : > { %p696_p2 = pneg %p1201_p0  ;;  %p1213_p5 = pnand %p716_p1, %p1177_p4 }
  0x24   : > { %s1548_s1 = sld [smem:[#allocation25_spill]] }
  0x25   : > { %p1219_p7 = pnand %p696_p2, %p1172_p3 }
  0x27   : > { %p832_p9 = pneg %p1219_p7 }
  0x28   : > { %s202_s14 = sshll.u32 %s1545_s2, 4  ;;  %s203_s14 = int_to_ptr.vmem [resolvable:$true] %s202_s14 }
  0x2a   : > { %s830_s30 = scalar_lea.hbm %s1548_s1, 64 }
  0x2b   : > { %p831_p8 = scmp.ne.s32.totalorder %s1548_s1, %s830_s30  ;;  %p837_p13 = scmp.lt.u32.totalorder %s830_s30, %s1548_s1 }
  0x2d   : > { %p833_p4 = pnand %p832_p9, %p831_p8 }
  0x2f   : > { %p834_p11 = pneg %p833_p4 }
  0x31   : > { %p839_p1 = pnand %p837_p13, %p834_p11 }
  0x33   : > { %842 = shalt.err (!%p839_p1)
}
  0x34   : > { %s1068_s10 = smov [#allocation7]   ;;  %s843_s15 = scalar_lea.vmem %s203_s14, 16 }
  0x35   : > { %699 = dma.hbm_to_smem (!%p1219_p7), %s1548_s1, 64, %s1068_s10, [#allocation5]  }
  0x36   : > { %p844_p2 = scmp.ne.s32.totalorder %s203_s14, %s843_s15  ;;  %p851_p3 = scmp.lt.s32.totalorder %s203_s14, %s203_s14 }
  0x37   : > { %p852_p8 = scmp.lt.s32.totalorder %s843_s15, %s843_s15 }
  0x38   : > { %p846_p12 = pnand %p844_p2, %p832_p9 }
  0x39   : > { %p853_p4 = por %p852_p8, %p851_p3 }
  0x3a   : > { %p847_p10 = pneg %p846_p12 }
  0x3c   : > { %p854_p6 = pnand %p853_p4, %p847_p10 }
  0x3e   : > { %857 = shalt.err (!%p854_p6)
}
  0x3f   : > { %s1069_s2 = smov [#allocation8]   ;;  %s41_s30 = sadd.s32 1, %s1058_s25 }
  0x40   : > { %702 = dma.vmem_to_smem (!%p1219_p7), %s203_s14, 16, %s1069_s2, [#allocation6]  }
  0x41   : > { %s38_s10 = sadd.s32 1, %s1054_s24  ;;  %s45_s15 = sadd.s32 1, %s1062_s26 }
  0x42   : > { %p39_p3 = scmp.ge.s32.totalorder %s38_s10, 2  ;;  %s636_s12 = sshll.u32 %s1058_s25, 1 }
  0x43   : > { %s50_s13 = sadd.s32 %s1054_s24, %s636_s12  ;;  %s213_s7 = sand.u32 1, %s1038_s20  }
  0x44   : > { %s1580_s10 = smov (%p39_p3, %s38_s10), 0  ;;  %s1582_s30 = smov (!%p39_p3, %s41_s30), %s1058_s25 }
  0x45   : > { %1549 = sst [smem:[#allocation22_spill]] %s1580_s10  ;;  %s642_s28 = sshll.u32 %s213_s7, 5 }
  0x46   : > { %p43_p6 = scmp.ge.s32.totalorder %s1582_s30, 2  ;;  %s644_s6 = sshll.u32 %s1062_s26, 4 }
  0x47   : > { %s217_s29 = scalar_lea.vmem [#allocation2], %s642_s28  ;;  %s224_s27 = sadd.s32 %s644_s6, %s50_s13 }
  0x48   : > { %s227_s1 = sshll.u32 %s217_s29, 4  ;;  %s1584_s30 = smov (%p43_p6, %s1582_s30), 0  ;;  %s1260_s1 = int_to_ptr.vmem [resolvable:$true] %s227_s1 }
  0x49   : > { %1550 = sst [smem:[#allocation23_spill]] %s1584_s30  ;;  %s1586_s15 = smov (!%p43_p6, %s45_s15), %s1062_s26 }
  0x4a   : > { %s637_s14 = sshll.u32 %s1584_s30, 1  ;;  %s124_s2 = ssub.s32 %s1058_s25, %s1584_s30 }
  0x4b   : > { %p47_p10 = scmp.ge.s32.totalorder %s1586_s15, 2  ;;  %s52_s12 = sadd.s32 %s637_s14, %s1580_s10 }
  0x4c   : > { %s54_s24 = ssub.s32 %s50_s13, %s52_s12  ;;  %s645_s28 = sshll.u32 %s224_s27, 7 }
  0x4d   : > { %s1588_s15 = smov (%p47_p10, %s1586_s15), 0  ;;  %s1267_s9 = scalar_lea.hbm %s1509_s0, %s645_s28 }
  0x4e   : > { %1551 = sst [smem:[#allocation24_spill]] %s1588_s15  ;;  %s53_s29 = ssub.s32 %s1062_s26, %s1588_s15 }
  0x4f   : > { %s55_s14 = sor.u32 %s54_s24, %s53_s29  ;;  %s125_s12 = sor.u32 %s124_s2, %s53_s29 }
  0x50   : > { %p56_p12 = scmp.eq.s32.totalorder %s55_s14, 0  ;;  %p126_p7 = scmp.eq.s32.totalorder %s125_s12, 0 }
  0x51   : > { %s1552_s13 = sadd.s32 1, %s1038_s20  ;;  %s1553_s27 = sadd.s32 1, %s1026_s17 }
  0x52   : > { %s1272_s6 = scalar_select %p56_p12, %s1038_s20, %s1552_s13  }
  0x53   : > { %s1277_s30 = scalar_select %p126_p7, %s1026_s17, %s1553_s27  }
  0x54   : > { %s1279_s15 = scalar_lea.sflag [#allocation3], %s213_s7  ;;  %s858_s10 = scalar_lea.hbm %s1267_s9, 512 }
  0x55   : > { %p859_p9 = scmp.ne.s32.totalorder %s1267_s9, %s858_s10  ;;  %p860_p11 = pneg %p1213_p5 }
  0x56   : > { %s863_s24 = scalar_lea.hbm %s1509_s0, 4096  ;;  %p864_p2 = scmp.lt.u32.totalorder %s1267_s9, %s1509_s0 }
  0x57   : > { %p861_p13 = pnand %p860_p11, %p859_p9  ;;  %p865_p8 = scmp.lt.u32.totalorder %s863_s24, %s858_s10 }
  0x58   : > { %p867_p3 = scmp.lt.u32.totalorder %s858_s10, %s1267_s9 }
  0x59   : > { %p862_p1 = pneg %p861_p13  ;;  %p866_p4 = por %p865_p8, %p864_p2 }
  0x5b   : > { %p868_p6 = por %p867_p3, %p866_p4 }
  0x5d   : > { %p869_p10 = pnand %p868_p6, %p862_p1 }
  0x5f   : > { %872 = shalt.err (!%p869_p10)
}
  0x60   : > { %s873_s7 = scalar_lea.vmem %s1260_s1, 512  ;;  %s1070_s29 = smov [#allocation2]  }
  0x61   : > { %p874_p12 = scmp.ne.s32.totalorder %s1260_s1, %s873_s7  ;;  %s878_s14 = sshll.u32 %s1070_s29, 4  ;;  %s879_s14 = int_to_ptr.vmem [resolvable:$false] %s878_s14 }
  0x62   : > { %s880_s12 = scalar_lea.vmem %s879_s14, 1024  ;;  %p881_p13 = scmp.lt.s32.totalorder %s1260_s1, %s879_s14 }
  0x63   : > { %p876_p7 = pnand %p874_p12, %p860_p11  ;;  %p882_p2 = scmp.lt.s32.totalorder %s880_s12, %s873_s7 }
  0x65   : > { %p877_p9 = pneg %p876_p7  ;;  %p883_p8 = por %p882_p2, %p881_p13 }
  0x67   : > { %p884_p4 = pnand %p883_p8, %p877_p9 }
  0x69   : > { %887 = shalt.err (!%p884_p4)
}
  0x6a   : > { %s1071_s10 = smov 512   ;;  %s1072_s13 = smov 128  }
  0x6b   : > { %s1073_s27 = smov 8   ;;  %239 = sbr.rel (%p1201_p0) target bundleno = 202 (0xca), region = 32 }
  0x6c   : > { %706 = dma.hbm_to_vmem [thread:$0]  (!%p1213_p5), %s1267_s9, 512, %s1260_s1, %s1279_s15, %s1071_s10, %s1072_s13, %s1073_s27  }
  0x6d   : > { %s241_s3 = sand.u32 (!%p1201_p0), 1, %s1034_s19   ;;  %p1554_p11 = scmp.ne.s32.totalorder (!%p1201_p0), %s1539_s8, 0 }
  0x6e   : > { %s647_s4 = sshll.u32 (!%p1201_p0), %s241_s3, 5  ;;  %s242_s24 = scalar_lea.sflag (!%p1201_p0), [#allocation3], %s241_s3 }
  0x6f   : > { %s245_s2 = scalar_lea.vmem (!%p1201_p0), [#allocation2], %s647_s4 }
  0x72   : > { %997 = dma.done.wait (%p1554_p11), %s242_s24, 512  }
  0x73   : > { %999 = vsyncadd (%p1554_p11), %s242_s24, 4294966784  ;;  %p1555_p1 = scmp.ne.s32.totalorder %s1537_s5, 0 }
  0x75   : > { %1001 = dma.done.wait (%p1555_p1), [#allocation5], 64  }
  0x76   : > { %1003 = vsyncadd (%p1555_p1), [#allocation5], 4294967232 }
  0x77   : > { %1005 = dma.done.wait (%p1555_p1), [#allocation6], 16  }
  0x78   : > { %1007 = vsyncadd (%p1555_p1), [#allocation6], 4294967280 }
  0x79   : > { %258 = sfence }
  0x7a   : > { %s1323_s1 = sand.u32 1, %s1022_s16   ;;  %s293_s9 = sld [smem:[#allocation7]]  ;;  %v286_v0 = vld [vmem:[%s245_s2] sm:$0xff]  ;;  %v652_v1 = vld [vmem:[%s245_s2 + $0x8] sm:$0xff]  ;;  %v653_v3 = vld [vmem:[%s245_s2 + $0x10] sm:$0xff] }
  0x7b   : > { %s650_s8 = sshll.u32 %s1323_s1, 2  ;;  %s655_s11 = sld [smem:[#allocation7 + $0x1]]  ;;  %v654_v4 = vld [vmem:[%s245_s2 + $0x18] sm:$0xff] }
  0x7c   : > { %s656_s18 = sld [smem:[#allocation7 + $0x2]]  ;;  %s657_s15 = sld [smem:[#allocation7 + $0x3]] }
  0x7d   : > { %s658_s28 = sld [smem:[#allocation7 + $0x80]]  ;;  %s1326_s7 = sld [smem:[#allocation7 + $0x81]] }
  0x7e   : > { %s1328_s29 = sld [smem:[#allocation7 + $0x82]]  ;;  %s1330_s14 = sld [smem:[#allocation7 + $0x83]] }
  0x7f   : > { %s1332_s5 = sld [smem:[#allocation7 + $0x100]]  ;;  %s1334_s12 = sld [smem:[#allocation7 + $0x101]] }
  0x80   : > { %v294_v2 = vstv %s293_s9  ;;  %s1336_s10 = sld [smem:[#allocation7 + $0x102]]  ;;  %s1338_s13 = sld [smem:[#allocation7 + $0x103]] }
  0x81   : > { %v295_v5 = vmul.f32 %v294_v2, %v286_v0  ;;  %v297_v6 = vstv %s655_s11  ;;  %s1340_s27 = sld [smem:[#allocation7 + $0x180]]  ;;  %s1342_s3 = sld [smem:[#allocation7 + $0x181]] }
  0x82   : > { %v298_v7 = vmul.f32 %v652_v1, %v297_v6  ;;  %v301_v8 = vstv %s656_s18  ;;  %v305_v9 = vstv %s657_s15  ;;  %s1344_s4 = sld [smem:[#allocation7 + $0x182]]  ;;  %s1346_s24 = sld [smem:[#allocation7 + $0x183]] }
  0x83   : > { %v302_v11 = vmul.f32 %v653_v3, %v301_v8  ;;  %v306_v12 = vmul.f32 %v654_v4, %v305_v9  ;;  %v309_v13 = vstv %s658_s28  ;;  %s1348_s2 = sld [smem:[#allocation8]]  ;;  %s1350_s9 = sld [smem:[#allocation8 + $0x1]]  ;;  %v312_v15 = vstv %s1326_s7 }
  0x84   : > { %v299_v10 = vadd.f32 %v298_v7, %v295_v5  ;;  %v310_v14 = vmul.f32 %v309_v13, %v286_v0  ;;  %v316_v16 = vstv %s1328_s29  ;;  %v320_v17 = vstv %s1330_s14  ;;  %s1355_s11 = sld [smem:[#allocation8 + $0x2]]  ;;  %s672_s18 = sld [smem:[#allocation8 + $0x3]] }
  0x85   : > { %v313_v19 = vmul.f32 %v652_v1, %v312_v15  ;;  %v317_v20 = vmul.f32 %v653_v3, %v316_v16  ;;  %v321_v21 = vmul.f32 %v654_v4, %v320_v17  ;;  %v324_v22 = vstv %s1332_s5  ;;  %s1370_s15 = scalar_lea.vmem [#allocation9], %s650_s8  ;;  %s1374_s28 = scalar_lea.vmem [#allocation10], %s650_s8 }
  0x86   : > { %v303_v18 = vadd.f32 %v302_v11, %v299_v10  ;;  %v327_v23 = vstv %s1334_s12  ;;  %v331_v24 = vstv %s1336_s10  ;;  %v335_v25 = vstv %s1338_s13  ;;  %p673_p0 = scmp.ne.s32.totalorder %s1042_s21, 0 }
  0x87   : > { %v314_v27 = vadd.f32 %v313_v19, %v310_v14  ;;  %v325_v28 = vmul.f32 %v324_v22, %v286_v0  ;;  %v328_v29 = vmul.f32 %v652_v1, %v327_v23  ;;  %v332_v30 = vmul.f32 %v653_v3, %v331_v24 }
  0x88   : > { %v307_v26 = vadd.f32 %v306_v12, %v303_v18  ;;  %v336_v31 = vmul.f32 %v654_v4, %v335_v25  ;;  %v339_v32 = vstv %s1340_s27  ;;  %v342_v33 = vstv %s1342_s3 }
  0x89   : > { %v318_v34 = vadd.f32 %v317_v20, %v314_v27  ;;  %v329_v35 = vadd.f32 %v328_v29, %v325_v28  ;;  %v340_v36 = vmul.f32 %v339_v32, %v286_v0  ;;  %v343_v37 = vmul.f32 %v652_v1, %v342_v33 }
  0x8a   : > { %v346_v38 = vstv %s1344_s4  ;;  %v350_v39 = vstv %s1346_s24  ;;  %v354_v40 = vstv %s1348_s2  ;;  %v357_v41 = vstv %s1350_s9 }
  0x8b   : > { %v322_v42 = vadd.f32 %v321_v21, %v318_v34  ;;  %v333_v43 = vadd.f32 %v332_v30, %v329_v35  ;;  %v344_v44 = vadd.f32 %v343_v37, %v340_v36  ;;  %v347_v45 = vmul.f32 %v653_v3, %v346_v38  ;;  %368 = sbr.rel (%p673_p0) target bundleno = 146 (0x92), region = 48 }
  0x8c   : > { %v351_v46 = vmul.f32 %v654_v4, %v350_v39  ;;  %v355_v47 = vadd.f32 %v354_v40, %v307_v26  ;;  %v360_v48 = vstv %s1355_s11  ;;  %v363_v52 = vstv %s672_s18 }
  0x8d   : > { %v337_v49 = vadd.f32 %v336_v31, %v333_v43  ;;  %v348_v50 = vadd.f32 %v347_v45, %v344_v44  ;;  %v358_v51 = vadd.f32 %v357_v41, %v322_v42  ;;  %v1074_v56 = vmov (!%p673_p0), 0.0  }
  0x8e   : > { %369 = vst [vmem:[%s1370_s15] sm:$0xf] (!%p673_p0), %v1074_v56  ;;  %370 = vst [vmem:[%s1374_s28] sm:$0xf] (!%p673_p0), %v1074_v56 }
  0x8f   : > { %v352_v53 = vadd.f32 %v351_v46, %v348_v50  ;;  %v361_v54 = vadd.f32 %v360_v48, %v337_v49 }
  0x91   : > { %v364_v55 = vadd.f32 %v363_v52, %v352_v53 }
  0x92 PF: > { %v373_v57 = vrot.slane %v355_v47, 4  ;;  %v371_v58 = vmul.f32 %v355_v47, %v355_v47  ;;  %v392_v59 = vrot.slane %v358_v51, 4  ;;  %v390_v60 = vmul.f32 %v358_v51, %v358_v51  ;;  %s676_s21 = sshll.u32 %s1050_s23, 1  ;;  %s468_s8 = sshll.u32 %s1370_s15, 4  ;;  %s1396_s8 = int_to_ptr.vmem [resolvable:$true] %s468_s8 }
  0x93   : > { %v409_v61 = vmul.f32 %v361_v54, %v361_v54  ;;  %v428_v62 = vmul.f32 %v364_v55, %v364_v55  ;;  %v411_v3 = vrot.slane %v361_v54, 4  ;;  %v430_v5 = vrot.slane %v364_v55, 4  ;;  %s1385_s23 = sadd.s32 %s1046_s22, %s676_s21  ;;  %s483_s7 = sshll.u32 %s1374_s28, 4  ;;  %s1410_s7 = int_to_ptr.vmem [resolvable:$true] %s483_s7 }
  0x94   : > { %v374_v63 = vadd.f32 %v373_v57, %v355_v47  ;;  %v382_v0 = vrot.slane %v371_v58, 4  ;;  %v393_v1 = vadd.f32 %v392_v59, %v358_v51  ;;  %v401_v2 = vrot.slane %v390_v60, 4  ;;  %s677_s22 = sshll.u32 %s1385_s23, 6  ;;  %s1556_s29 = sld [smem:[#allocation20_spill]] }
  0x95   : > { %v420_v4 = vrot.slane %v409_v61, 4  ;;  %v439_v6 = vrot.slane %v428_v62, 4  ;;  %v412_v11 = vadd.f32 %v411_v3, %v361_v54  ;;  %v431_v13 = vadd.f32 %v430_v5, %v364_v55  ;;  %v372_v23 = vld [vmem:[%s1370_s15] sm:$0x1]  ;;  %v381_v28 = vld [vmem:[%s1374_s28] sm:$0x1] }
  0x96   : > { %v375_v7 = vrot.slane %v374_v63, 2  ;;  %v383_v8 = vadd.f32 %v382_v0, %v371_v58  ;;  %v394_v9 = vrot.slane %v393_v1, 2  ;;  %v402_v10 = vadd.f32 %v401_v2, %v390_v60  ;;  %v391_v29 = vld [vmem:[%s1370_s15 + $0x1] sm:$0x1]  ;;  %v400_v30 = vld [vmem:[%s1374_s28 + $0x1] sm:$0x1] }
  0x97   : > { %v421_v12 = vadd.f32 %v420_v4, %v409_v61  ;;  %v440_v14 = vadd.f32 %v439_v6, %v428_v62  ;;  %v413_v19 = vrot.slane %v412_v11, 2  ;;  %v432_v21 = vrot.slane %v431_v13, 2  ;;  %v410_v39 = vld [vmem:[%s1370_s15 + $0x2] sm:$0x1]  ;;  %v419_v40 = vld [vmem:[%s1374_s28 + $0x2] sm:$0x1] }
  0x98   : > { %v376_v15 = vadd.f32 %v375_v7, %v374_v63  ;;  %v384_v16 = vrot.slane %v383_v8, 2  ;;  %v395_v17 = vadd.f32 %v394_v9, %v393_v1  ;;  %v403_v18 = vrot.slane %v402_v10, 2  ;;  %v429_v49 = vld [vmem:[%s1370_s15 + $0x3] sm:$0x1]  ;;  %v438_v50 = vld [vmem:[%s1374_s28 + $0x3] sm:$0x1] }
  0x99   : > { %v422_v20 = vrot.slane %v421_v12, 2  ;;  %v441_v22 = vrot.slane %v440_v14, 2  ;;  %v414_v31 = vadd.f32 %v413_v19, %v412_v11  ;;  %v433_v33 = vadd.f32 %v432_v21, %v431_v13  ;;  %s1557_s12 = sld [smem:[#allocation27_spill]]  ;;  %s1558_s3 = sld [smem:[#allocation28_spill]] }
  0x9a   : > { %v377_v24 = vrot.slane %v376_v15, 1  ;;  %v385_v25 = vadd.f32 %v384_v16, %v383_v8  ;;  %v396_v26 = vrot.slane %v395_v17, 1  ;;  %v404_v27 = vadd.f32 %v403_v18, %v402_v10  ;;  %s448_s24 = scalar_lea.sflag [#allocation4], %s1323_s1  ;;  %s888_s2 = scalar_lea.vmem %s1396_s8, 64 }
  0x9b   : > { %v423_v32 = vadd.f32 %v422_v20, %v421_v12  ;;  %v442_v34 = vadd.f32 %v441_v22, %v440_v14  ;;  %v415_v41 = vrot.slane %v414_v31, 1  ;;  %v434_v43 = vrot.slane %v433_v33, 1  ;;  %p889_p5 = scmp.ne.s32.totalorder %s1396_s8, %s888_s2  ;;  %p1559_p3 = scmp.ne.s32.totalorder %s1556_s29, 0 }
  0x9c   : > { %v378_v35 = vadd.f32 %v377_v24, %v376_v15  ;;  %v386_v36 = vrot.slane %v385_v25, 1  ;;  %v397_v37 = vadd.f32 %v396_v26, %v395_v17  ;;  %v405_v38 = vrot.slane %v404_v27, 1  ;;  %s1075_s9 = smov [#allocation9]  }
  0x9d   : > { %v424_v42 = vrot.slane %v423_v32, 1  ;;  %v443_v44 = vrot.slane %v442_v34, 1  ;;  %v416_v51 = vadd.f32 %v415_v41, %v414_v31  ;;  %v435_v53 = vadd.f32 %v434_v43, %v433_v33  ;;  %p890_p6 = pnand %p889_p5, %p1559_p3  ;;  %s892_s11 = sshll.u32 %s1075_s9, 4  ;;  %s893_s11 = int_to_ptr.vmem [resolvable:$false] %s892_s11 }
  0x9e   : > { %v379_v45 = vadd.f32 %v378_v35, %v372_v23  ;;  %v387_v46 = vadd.f32 %v386_v36, %v385_v25  ;;  %v398_v47 = vadd.f32 %v397_v37, %v391_v29  ;;  %v406_v48 = vadd.f32 %v405_v38, %v404_v27  ;;  %s894_s18 = scalar_lea.vmem %s893_s11, 128  ;;  %p895_p12 = scmp.lt.s32.totalorder %s1396_s8, %s893_s11 }
  0x9f   : > { %v425_v52 = vadd.f32 %v424_v42, %v423_v32  ;;  %v444_v54 = vadd.f32 %v443_v44, %v442_v34  ;;  %v417_v57 = vadd.f32 %v416_v51, %v410_v39  ;;  %v436_v59 = vadd.f32 %v435_v53, %v429_v49  ;;  %s1401_s10 = scalar_lea.hbm %s1557_s12, %s677_s22  ;;  %s1408_s4 = scalar_lea.hbm %s1558_s3, %s677_s22 }
  0xa0   : > { %380 = vst [vmem:[%s1370_s15] sm:$0x1] %v379_v45  ;;  %v388_v55 = vadd.f32 %v387_v46, %v381_v28  ;;  %399 = vst [vmem:[%s1370_s15 + $0x1] sm:$0x1] %v398_v47  ;;  %v407_v56 = vadd.f32 %v406_v48, %v400_v30  ;;  %p891_p10 = pneg %p890_p6  ;;  %p896_p7 = scmp.lt.s32.totalorder %s894_s18, %s888_s2 }
  0xa1   : > { %v426_v58 = vadd.f32 %v425_v52, %v419_v40  ;;  %v445_v60 = vadd.f32 %v444_v54, %v438_v50  ;;  %418 = vst [vmem:[%s1370_s15 + $0x2] sm:$0x1] %v417_v57  ;;  %437 = vst [vmem:[%s1370_s15 + $0x3] sm:$0x1] %v436_v59 }
  0xa2   : > { %389 = vst [vmem:[%s1374_s28] sm:$0x1] %v388_v55  ;;  %408 = vst [vmem:[%s1374_s28 + $0x1] sm:$0x1] %v407_v56  ;;  %p897_p9 = por %p896_p7, %p895_p12 }
  0xa3   : > { %427 = vst [vmem:[%s1374_s28 + $0x2] sm:$0x1] %v426_v58  ;;  %446 = vst [vmem:[%s1374_s28 + $0x3] sm:$0x1] %v445_v60 }
  0xa4   : > { %p898_p13 = pnand %p897_p9, %p891_p10 }
  0xa6   : > { %901 = shalt.err (!%p898_p13)
}
  0xa7   : > { %s902_s15 = scalar_lea.hbm %s1401_s10, 64  ;;  %s906_s23 = scalar_lea.hbm %s1557_s12, 256 }
  0xa8   : > { %p903_p2 = scmp.ne.s32.totalorder %s1401_s10, %s902_s15  ;;  %p907_p11 = scmp.lt.u32.totalorder %s1401_s10, %s1557_s12 }
  0xa9   : > { %p908_p1 = scmp.lt.u32.totalorder %s906_s23, %s902_s15  ;;  %p910_p5 = scmp.lt.u32.totalorder %s902_s15, %s1401_s10 }
  0xaa   : > { %p904_p8 = pnand %p903_p2, %p1559_p3 }
  0xab   : > { %p909_p0 = por %p908_p1, %p907_p11 }
  0xac   : > { %p905_p4 = pneg %p904_p8 }
  0xad   : > { %p911_p6 = por %p910_p5, %p909_p0 }
  0xaf   : > { %p912_p10 = pnand %p911_p6, %p905_p4 }
  0xb1   : > { %915 = shalt.err (!%p912_p10)
}
  0xb2   : > { %692 = dma.vmem_to_hbm [thread:$0]  (%p1559_p3), %s1396_s8, 64, %s1401_s10, %s448_s24  }
  0xb3   : > { %s453_s5 = scalar_lea.sflag [#allocation11], %s1323_s1  ;;  %s916_s13 = scalar_lea.vmem %s1410_s7, 64 }
  0xb4   : > { %p917_p12 = scmp.ne.s32.totalorder %s1410_s7, %s916_s13  ;;  %s1076_s27 = smov [#allocation10]  }
  0xb5   : > { %s920_s2 = sshll.u32 %s1076_s27, 4  ;;  %s921_s2 = int_to_ptr.vmem [resolvable:$false] %s920_s2 }
  0xb6   : > { %p918_p7 = pnand %p917_p12, %p1559_p3  ;;  %s922_s9 = scalar_lea.vmem %s921_s2, 128 }
  0xb7   : > { %p923_p13 = scmp.lt.s32.totalorder %s1410_s7, %s921_s2  ;;  %p924_p2 = scmp.lt.s32.totalorder %s922_s9, %s916_s13 }
  0xb8   : > { %p919_p9 = pneg %p918_p7 }
  0xb9   : > { %p925_p8 = por %p924_p2, %p923_p13 }
  0xbb   : > { %p926_p4 = pnand %p925_p8, %p919_p9 }
  0xbd   : > { %929 = shalt.err (!%p926_p4)
}
  0xbe   : > { %s930_s1 = scalar_lea.hbm %s1408_s4, 64  ;;  %s934_s24 = scalar_lea.hbm %s1558_s3, 256 }
  0xbf   : > { %p931_p11 = scmp.ne.s32.totalorder %s1408_s4, %s930_s1  ;;  %p935_p5 = scmp.lt.u32.totalorder %s1408_s4, %s1558_s3 }
  0xc0   : > { %p936_p6 = scmp.lt.u32.totalorder %s934_s24, %s930_s1  ;;  %p938_p12 = scmp.lt.u32.totalorder %s930_s1, %s1408_s4 }
  0xc1   : > { %p932_p1 = pnand %p931_p11, %p1559_p3 }
  0xc2   : > { %p937_p10 = por %p936_p6, %p935_p5 }
  0xc3   : > { %p933_p0 = pneg %p932_p1 }
  0xc4   : > { %p939_p7 = por %p938_p12, %p937_p10 }
  0xc6   : > { %p940_p9 = pnand %p939_p7, %p933_p0 }
  0xc8   : > { %943 = shalt.err (!%p940_p9)
}
  0xc9   : > { %693 = dma.vmem_to_hbm [thread:$0]  (%p1559_p3), %s1410_s7, 64, %s1408_s4, %s453_s5  }
  0xca PF: > { %s1560_s15 = sld [smem:[#allocation19_spill]]  ;;  %s1561_s28 = sld [smem:[#allocation17_spill]] }
  0xcb   : > { %s1562_s21 = sld [smem:[#allocation21_spill]] }
  0xd0   : > { %p719_p13 = scmp.ge.s32.totalorder %s1560_s15, 2  ;;  %s495_s23 = sand.u32 1, %s1561_s28  }
  0xd1   : > { %p1563_p2 = scmp.ne.s32.totalorder %s1562_s21, 0  ;;  %s496_s22 = scalar_lea.sflag [#allocation4], %s495_s23 }
  0xd3   : > { %p708_p8 = pnand %p719_p13, %p1563_p2 }
  0xd5   : > { %1009 = dma.done.wait (!%p708_p8), %s496_s22, 64  }
  0xd6   : > { %1011 = vsyncadd (!%p708_p8), %s496_s22, 4294967232  ;;  %s505_s14 = scalar_lea.sflag [#allocation11], %s495_s23 }
  0xd7   : > { %1013 = dma.done.wait (!%p708_p8), %s505_s14, 64  }
  0xd8   : > { %1015 = vsyncadd (!%p708_p8), %s505_s14, 4294967232  ;;  %s26_s27 = sadd.s32 1, %s1560_s15   ;;  %s1565_s21 = sld [smem:[#allocation18_spill]] }
  0xd9   : > { %p1465_p4 = scmp.ge.s32.totalorder %s26_s27, 10   ;;  %s1566_s24 = sld [smem:[#allocation22_spill]] }
  0xda   : > { %s1567_s7 = sld [smem:[#allocation23_spill]]  ;;  %s1568_s4 = sld [smem:[#allocation24_spill]] }
  0xdb   : > { %s1569_s15 = smov %s1022_s16  ;;  %s1570_s16 = smov %s1026_s17 }
  0xdc   : > { %s1571_s17 = smov %s1277_s30  ;;  %s1572_s18 = smov %s1034_s19 }
  0xdd   : > { %s1573_s19 = smov %s1038_s20  ;;  %s1574_s20 = smov %s1272_s6 }
  0xde   : > { %s1575_s22 = smov %s1058_s25  ;;  %s1576_s23 = smov %s1062_s26 }
  0xdf   :  { %25 = sbr.rel (!%p1465_p4) target bundleno = 19 (0x13), region = 111 }
  0xe0   : > { %s1577_s25 = smov %s1567_s7  ;;  %s1578_s26 = smov %s1568_s4 }
  0xe6   :  { %510 = vsyncpa [#allocation3], 1 }
  0xe7   :  { %512 = vsyncpa [#allocation3 + $0x1], 1 }
  0xe8   :  { %513 = vsyncpa [#allocation4], 1 }
  0xe9   :  { %515 = vsyncpa [#allocation4 + $0x1], 1 }
  0xea   :  { %516 = vsyncpa [#allocation11], 1 }
  0xeb   :  { %518 = vsyncpa [#allocation11 + $0x1], 1 }
  0xec   :  { %519 = vsyncpa [#allocation5], 1 }
  0xed   :  { %521 = vsyncpa [#allocation5 + $0x1], 1 }
  0xee   :  { %522 = vsyncpa [#allocation6], 1 }
  0xef   :  { %524 = vsyncpa [#allocation6 + $0x1], 1 }

</bundles_post_ra>
